<compile_context>
chip_gen: v5e
topology: v5e:2x2
jax: 0.10.0
libtpu: 0.0.40
codegen_flags: <defaults>
</compile_context>

<pallas_src>
import functools
import math

import jax
import jax.numpy as jnp
from jax.experimental import pallas as pl
from jax.experimental.pallas import tpu as pltpu


def _attention_kernel(key_ref, query_ref, value_ref, wfold_ref, wvt_ref, out_ref,
                      *, inv_scale):
    # One batch item per grid step; the leading size-1 block dim is indexed away.
    k = key_ref[0]                       # [ISL, IN]  bf16
    v = value_ref[0]                     # [ISL, IN]  bf16
    q = query_ref[0]                     # [1,  OUT]  bf16

    # query folded through Wq^T @ Wk  (single MXU dot, f32 accumulation)
    q_fold = jnp.dot(q, wfold_ref[...], preferred_element_type=jnp.float32)   # [1, IN] f32

    # attention scores over sequence positions (VPU mul + lane reduce), f32
    s = jnp.sum(k.astype(jnp.float32) * q_fold, axis=-1, keepdims=True) * inv_scale  # [ISL, 1]

    # numerically-stable softmax over the sequence axis, kept in f32
    s = s - jnp.max(s, axis=0, keepdims=True)
    e = jnp.exp(s)
    a = e * pl.reciprocal(jnp.sum(e, axis=0, keepdims=True), approx=True)     # [ISL, 1]

    # reassociated value path: (attn @ value) @ Wv^T
    p = jnp.sum(v.astype(jnp.float32) * a, axis=0, keepdims=True)             # [1, IN] f32
    out_ref[0] = jnp.dot(p.astype(jnp.bfloat16), wvt_ref[...],
                         preferred_element_type=jnp.float32).astype(out_ref.dtype)


def prepare_attention_params(wk, wq, wv, *, out_pad):
    """wk:[H,IN], wq:[H,OUT], wv:[OUT,IN]  (PyTorch Linear weight layout).

    Folds Wq^T @ Wk once and stores Wv^T zero-padded to `out_pad` lanes, both bf16."""
    out_dim = wv.shape[0]
    w_fold = (wq.T @ wk).astype(jnp.bfloat16)                                 # [OUT, IN]
    wv_t = jnp.pad(wv.T, ((0, 0), (0, out_pad - out_dim))).astype(jnp.bfloat16)  # [IN, out_pad]
    return {"w_fold": w_fold, "wv_t": wv_t}


def attention_forward(key, query, value, params, *, hidden_dim, out_dim):
    """key/value: [B, ISL, IN]  query: [B, 1, OUT]  ->  [B, 1, OUT] (f32)."""
    B, ISL, IN = key.shape
    OUT_PAD = params["wv_t"].shape[1]

    kernel = functools.partial(_attention_kernel,
                               inv_scale=1.0 / math.sqrt(hidden_dim))

    out = pl.pallas_call(
        kernel,
        out_shape=jax.ShapeDtypeStruct((B, 1, OUT_PAD), jnp.float32),
        grid=(B,),
        in_specs=[
            pl.BlockSpec((1, ISL, IN), lambda b: (b, 0, 0)),          # key
            pl.BlockSpec((1, 1, out_dim), lambda b: (b, 0, 0)),       # query
            pl.BlockSpec((1, ISL, IN), lambda b: (b, 0, 0)),          # value
            pl.BlockSpec(params["w_fold"].shape, lambda b: (0, 0)),   # Wq^T@Wk (VMEM-resident)
            pl.BlockSpec(params["wv_t"].shape, lambda b: (0, 0)),     # Wv^T padded (VMEM-resident)
        ],
        out_specs=pl.BlockSpec((1, 1, OUT_PAD), lambda b: (b, 0, 0)),
        compiler_params=pltpu.CompilerParams(dimension_semantics=("parallel",)),
    )(key.astype(jnp.bfloat16), query.astype(jnp.bfloat16), value.astype(jnp.bfloat16),
      params["w_fold"], params["wv_t"])

    return out[:, :, :out_dim]   # drop lane-padding columns


def _reference_forward(key, query, value, wk, wq, wv, hidden_dim):
    """Pure-JAX f32 reference matching the PyTorch module exactly."""
    kp = key @ wk.T                                             # [B, ISL, H]
    qp = query @ wq.T                                           # [B, 1,  H]
    vp = value @ wv.T                                           # [B, ISL, OUT]
    scores = jnp.sum(kp * qp, axis=-1) / math.sqrt(hidden_dim)  # [B, ISL]
    attn = jax.nn.softmax(scores, axis=-1)[..., None]           # [B, ISL, 1]
    return jnp.sum(vp * attn, axis=1, keepdims=True)            # [B, 1, OUT]


if __name__ == "__main__":
    B, ISL = 2, 8
    INPUT_DIM, HIDDEN_DIM, OUT_DIM = 32, 32, 16
    OUT_PAD = max(128, ((OUT_DIM + 127) // 128) * 128)   # lane-dense output store

    root = jax.random.PRNGKey(0)
    kk, kq, kv, kwk, kwq, kwv = jax.random.split(root, 6)

    # PyTorch-Linear-style init (uniform +-1/sqrt(fan_in), bias=False)
    def lin_w(k, fan_out, fan_in):
        bound = 1.0 / math.sqrt(fan_in)
        return jax.random.uniform(k, (fan_out, fan_in), jnp.float32, -bound, bound)

    wk = lin_w(kwk, HIDDEN_DIM, INPUT_DIM)   # self.k = Linear(INPUT_DIM, HIDDEN_DIM)
    wq = lin_w(kwq, HIDDEN_DIM, OUT_DIM)     # self.q = Linear(OUT_DIM,   HIDDEN_DIM)
    wv = lin_w(kwv, OUT_DIM, INPUT_DIM)      # self.v = Linear(INPUT_DIM, OUT_DIM)

    key = jax.random.normal(kk, (B, ISL, INPUT_DIM), jnp.float32)
    query = jax.random.normal(kq, (B, 1, OUT_DIM), jnp.float32)
    value = jax.random.normal(kv, (B, ISL, INPUT_DIM), jnp.float32)

    params = prepare_attention_params(wk, wq, wv, out_pad=OUT_PAD)
    out = attention_forward(key, query, value, params,
                            hidden_dim=HIDDEN_DIM, out_dim=OUT_DIM)
    out = jax.block_until_ready(out)

    ref = _reference_forward(key, query, value, wk, wq, wv, HIDDEN_DIM)
    assert out.shape == (B, 1, OUT_DIM)
    err = float(jnp.max(jnp.abs(out - ref)))
    assert err < 3e-2, f"max abs err {err}"   # bf16 operands / f32 accumulation tolerance

    print("KERNEL_OK")
</pallas_src>

<mosaic_0001>
module attributes {stable_mosaic.version = 11 : i64} {
  func.func @_attention_kernel(%arg0: i32, %arg1: memref<1x8x32xbf16, #tpu.memory_space<vmem>>, %arg2: memref<1x1x16xbf16, #tpu.memory_space<vmem>>, %arg3: memref<1x8x32xbf16, #tpu.memory_space<vmem>>, %arg4: memref<16x32xbf16, #tpu.memory_space<vmem>>, %arg5: memref<32x128xbf16, #tpu.memory_space<vmem>>, %arg6: memref<1x1x128xf32, #tpu.memory_space<vmem>>) attributes {dimension_semantics = [#tpu.dimension_semantics<parallel>], iteration_bounds = array<i64: 2>, scalar_prefetch = 0 : i64, scratch_operands = 0 : i64, tpu.core_type = #tpu.core_type<tc>, window_params = [{transform_indices = @transform_0, window_bounds = array<i64: 1, 8, 32>}, {transform_indices = @transform_1, window_bounds = array<i64: 1, 1, 16>}, {transform_indices = @transform_2, window_bounds = array<i64: 1, 8, 32>}, {pipeline_mode = #tpu.pipeline_mode<synchronous>, transform_indices = @transform_3, window_bounds = array<i64: 16, 32>}, {pipeline_mode = #tpu.pipeline_mode<synchronous>, transform_indices = @transform_4, window_bounds = array<i64: 32, 128>}, {transform_indices = @transform_5, window_bounds = array<i64: 1, 1, 128>}]} {
    %c0 = arith.constant 0 : index
    %c0_0 = arith.constant 0 : index
    %c0_1 = arith.constant 0 : index
    %0 = vector.load %arg1[%c0, %c0_0, %c0_1] : memref<1x8x32xbf16, #tpu.memory_space<vmem>>, vector<1x8x32xbf16>
    %1 = vector.shape_cast %0 : vector<1x8x32xbf16> to vector<8x32xbf16>
    %c0_2 = arith.constant 0 : index
    %c0_3 = arith.constant 0 : index
    %c0_4 = arith.constant 0 : index
    %2 = vector.load %arg3[%c0_2, %c0_3, %c0_4] : memref<1x8x32xbf16, #tpu.memory_space<vmem>>, vector<1x8x32xbf16>
    %3 = vector.shape_cast %2 : vector<1x8x32xbf16> to vector<8x32xbf16>
    %c0_5 = arith.constant 0 : index
    %c0_6 = arith.constant 0 : index
    %c0_7 = arith.constant 0 : index
    %4 = vector.load %arg2[%c0_5, %c0_6, %c0_7] : memref<1x1x16xbf16, #tpu.memory_space<vmem>>, vector<1x1x16xbf16>
    %5 = vector.shape_cast %4 : vector<1x1x16xbf16> to vector<1x16xbf16>
    %c0_8 = arith.constant 0 : index
    %c0_9 = arith.constant 0 : index
    %6 = vector.load %arg4[%c0_8, %c0_9] : memref<16x32xbf16, #tpu.memory_space<vmem>>, vector<16x32xbf16>
    %cst = arith.constant dense<0.000000e+00> : vector<1x32xf32>
    %7 = tpu.matmul %5, %6, %cst {dimension_numbers = #tpu.dot_dimension_numbers<[1], [0], [0], [1], [0, 0, 1, 1], [], []>} : vector<1x16xbf16>, vector<16x32xbf16>, vector<1x32xf32> -> vector<1x32xf32>
    %8 = arith.extf %1 : vector<8x32xbf16> to vector<8x32xf32>
    %9 = vector.broadcast %7 : vector<1x32xf32> to vector<8x32xf32>
    %10 = arith.mulf %8, %9 : vector<8x32xf32>
    %cst_10 = arith.constant dense<0.000000e+00> : vector<8xf32>
    %11 = vector.multi_reduction <add>, %10, %cst_10 [1] : vector<8x32xf32> to vector<8xf32>
    %12 = vector.shape_cast %11 : vector<8xf32> to vector<8x1xf32>
    %cst_11 = arith.constant 0.176776692 : f32
    %13 = vector.broadcast %cst_11 : f32 to vector<8x1xf32>
    %14 = arith.mulf %12, %13 : vector<8x1xf32>
    %cst_12 = arith.constant dense<0xFF800000> : vector<1xf32>
    %15 = vector.multi_reduction <maximumf>, %14, %cst_12 [0] : vector<8x1xf32> to vector<1xf32>
    %16 = vector.shape_cast %15 : vector<1xf32> to vector<1x1xf32>
    %17 = vector.broadcast %16 : vector<1x1xf32> to vector<8x1xf32>
    %18 = arith.subf %14, %17 : vector<8x1xf32>
    %19 = math.exp %18 : vector<8x1xf32>
    %cst_13 = arith.constant dense<0.000000e+00> : vector<1xf32>
    %20 = vector.multi_reduction <add>, %19, %cst_13 [0] : vector<8x1xf32> to vector<1xf32>
    %21 = vector.shape_cast %20 : vector<1xf32> to vector<1x1xf32>
    %22 = tpu.reciprocal %21 {approx = true} : vector<1x1xf32> -> vector<1x1xf32>
    %23 = vector.broadcast %22 : vector<1x1xf32> to vector<8x1xf32>
    %24 = arith.mulf %19, %23 : vector<8x1xf32>
    %25 = arith.extf %3 : vector<8x32xbf16> to vector<8x32xf32>
    %26 = vector.broadcast %24 : vector<8x1xf32> to vector<8x32xf32>
    %27 = arith.mulf %25, %26 : vector<8x32xf32>
    %cst_14 = arith.constant dense<0.000000e+00> : vector<32xf32>
    %28 = vector.multi_reduction <add>, %27, %cst_14 [0] : vector<8x32xf32> to vector<32xf32>
    %29 = vector.shape_cast %28 : vector<32xf32> to vector<1x32xf32>
    %30 = arith.truncf %29 : vector<1x32xf32> to vector<1x32xbf16>
    %c0_15 = arith.constant 0 : index
    %c0_16 = arith.constant 0 : index
    %31 = vector.load %arg5[%c0_15, %c0_16] : memref<32x128xbf16, #tpu.memory_space<vmem>>, vector<32x128xbf16>
    %cst_17 = arith.constant dense<0.000000e+00> : vector<1x128xf32>
    %32 = tpu.matmul %30, %31, %cst_17 {dimension_numbers = #tpu.dot_dimension_numbers<[1], [0], [0], [1], [0, 0, 1, 1], [], []>} : vector<1x32xbf16>, vector<32x128xbf16>, vector<1x128xf32> -> vector<1x128xf32>
    %c0_18 = arith.constant 0 : index
    %c0_19 = arith.constant 0 : index
    %c0_20 = arith.constant 0 : index
    %33 = vector.load %arg6[%c0_18, %c0_19, %c0_20] : memref<1x1x128xf32, #tpu.memory_space<vmem>>, vector<1x1x128xf32>
    %34 = vector.shape_cast %33 : vector<1x1x128xf32> to vector<1x128xf32>
    %35 = vector.shape_cast %32 : vector<1x128xf32> to vector<1x1x128xf32>
    tpu.vector_store %arg6[%c0_18, %c0_19, %c0_20], %35 {strides = array<i32>} : memref<1x1x128xf32, #tpu.memory_space<vmem>>, vector<1x1x128xf32>,
    return
  }
  func.func @transform_0(%arg0: i32) -> (i32, i32, i32) {
    %c0_i32 = arith.constant 0 : i32
    %c0_i32_0 = arith.constant 0 : i32
    %c0_i32_1 = arith.constant 0 : i32
    return %arg0, %c0_i32, %c0_i32_0 : i32, i32, i32
  }
  func.func @transform_1(%arg0: i32) -> (i32, i32, i32) {
    %c0_i32 = arith.constant 0 : i32
    %c0_i32_0 = arith.constant 0 : i32
    %c0_i32_1 = arith.constant 0 : i32
    return %arg0, %c0_i32, %c0_i32_0 : i32, i32, i32
  }
  func.func @transform_2(%arg0: i32) -> (i32, i32, i32) {
    %c0_i32 = arith.constant 0 : i32
    %c0_i32_0 = arith.constant 0 : i32
    %c0_i32_1 = arith.constant 0 : i32
    return %arg0, %c0_i32, %c0_i32_0 : i32, i32, i32
  }
  func.func @transform_3(%arg0: i32) -> (i32, i32) {
    %c0_i32 = arith.constant 0 : i32
    %c0_i32_0 = arith.constant 0 : i32
    %c0_i32_1 = arith.constant 0 : i32
    return %c0_i32, %c0_i32_0 : i32, i32
  }
  func.func @transform_4(%arg0: i32) -> (i32, i32) {
    %c0_i32 = arith.constant 0 : i32
    %c0_i32_0 = arith.constant 0 : i32
    %c0_i32_1 = arith.constant 0 : i32
    return %c0_i32, %c0_i32_0 : i32, i32
  }
  func.func @transform_5(%arg0: i32) -> (i32, i32, i32) {
    %c0_i32 = arith.constant 0 : i32
    %c0_i32_0 = arith.constant 0 : i32
    %c0_i32_1 = arith.constant 0 : i32
    return %arg0, %c0_i32, %c0_i32_0 : i32, i32, i32
  }
}

</mosaic_0001>

<bundles_post_ra>
// kernel: tpu_custom_call.1
= control target key start
LH: loop header
LB: loop body
LE: loop exit
PB: predicated region body
PF: predicated region fallthrough
CT: control target
= control target key end

     0   :  { %s1087_s0 = inlined_call_operand.hbm [shape: bf16[2,8,32], index: 0, kind: input, shape index: {}]   ;;  %s1088_s1 = inlined_call_operand.vmem [shape: bf16[2,1,16], index: 1, kind: input, shape index: {}]   ;;  %s1089_s2 = inlined_call_operand.hbm [shape: bf16[2,8,32], index: 2, kind: input, shape index: {}]   ;;  %s1090_s3 = inlined_call_operand.hbm [shape: bf16[16,32], index: 3, kind: input, shape index: {}]   ;;  %s1091_s4 = inlined_call_operand.hbm [shape: bf16[32,128], index: 4, kind: input, shape index: {}]   ;;  %s1092_s5 = inlined_call_operand.hbm [shape: f32[2,1,128], index: 5, kind: output, shape index: {}]  }
   0x1   :  { %1094 = sst [smem:[#allocation18_spill]] %s1090_s3 }
   0x2   :  { %1095 = sst [smem:[#allocation19_spill]] %s1091_s4 }
   0x3   :  { %10 = vsyncpa [#allocation3], 0 }
   0x4   :  { %12 = vsyncpa [#allocation3 + $0x1], 0 }
   0x5   :  { %13 = vsyncpa [#allocation6], 0 }
   0x6   :  { %15 = vsyncpa [#allocation6 + $0x1], 0 }
   0x7   :  { %16 = vsyncpa [#allocation9], 0 }
   0x8   :  { %17 = vsyncpa [#allocation4], 0 }
   0x9   :  { %19 = vsyncpa [#allocation4 + $0x1], 0  ;;  %s899_s18 = smov 0   ;;  %s901_s19 = smov 0  }
   0xa   :  { %s903_s20 = smov 0   ;;  %s905_s21 = smov 0  }
   0xb LB: > { %1096 = sst [smem:[#allocation16_spill]] %s859_s20  ;;  %s923_s25 = sadd.s32 4294967295, %s863_s21   ;;  %s863_s21 = sphi %s905_s21, %s1111_s21   ;;  %s859_s20 = sphi %s903_s20, %s1108_s20   ;;  %s855_s19 = sphi %s901_s19, %s1110_s19   ;;  %s851_s18 = sphi %s899_s18, %s1109_s18  }
   0xc   : > { %s1097_s3 = sld [smem:[#allocation18_spill]]  ;;  %p555_p0 = scmp.ge.s32.totalorder %s863_s21, 1 }
   0xd   : > { %p46_p1 = scmp.eq.s32.totalorder %s923_s25, 0  ;;  %p176_p2 = scmp.lt.s32.totalorder %s863_s21, 3 }
   0xe   : > { %s865_s27 = smov [#allocation7]   ;;  %s1099_s4 = sld [smem:[#allocation19_spill]] }
   0xf   : > { %p928_p3 = pnand %p555_p0, %p176_p2  ;;  %s189_s28 = sshll.u32 %s865_s27, 4  ;;  %s190_s28 = int_to_ptr.vmem [resolvable:$true] %s189_s28 }
  0x10   : > { %s866_s7 = smov [#allocation8]   ;;  %s867_s9 = smov 64  }
  0x11   : > { %p601_p4 = pneg %p928_p3  ;;  %s203_s8 = sshll.u32 %s866_s7, 4  ;;  %s204_s8 = int_to_ptr.vmem [resolvable:$true] %s203_s8 }
  0x12   : > { %s187_s24 = sshll.u32 %s1097_s3, 4  ;;  %s868_s10 = smov 4   ;;  %s188_s24 = int_to_ptr.hbm [resolvable:$true] %s187_s24 }
  0x13   : > { %p602_p6 = pnand %p601_p4, %p46_p1  ;;  %s554_s11 = sadd.s32 4294967294, %s863_s21  }
  0x14   : > { %s201_s6 = sshll.u32 %s1099_s4, 4  ;;  %s942_s12 = sadd.s32 1, %s863_s21   ;;  %s202_s6 = int_to_ptr.hbm [resolvable:$true] %s201_s6 }
  0x15   : > { %604 = dma.hbm_to_vmem [thread:$0]  (!%p602_p6), %s188_s24, 128, %s190_s28, [#allocation6], %s867_s9, %s867_s9, %s868_s10  }
  0x16   : > { %607 = dma.hbm_to_vmem [thread:$0]  (!%p602_p6), %s202_s6, 256, %s204_s8, [#allocation9], %s867_s9, %s867_s9, %s868_s10  }
  0x17   : > { %s29_s13 = ssub.s32 %s863_s21, %s942_s12  ;;  %s32_s14 = sadd.s32 1, %s859_s20 }
  0x18   : > { %p30_p7 = scmp.eq.s32.totalorder %s29_s13, 0  ;;  %p39_p8 = scmp.ne.s32.totalorder %s859_s20, %s855_s19 }
  0x19   : > { %p40_p9 = scmp.eq.s32.totalorder %s863_s21, 0  ;;  %p45_p10 = scmp.ne.s32.totalorder %s855_s19, %s851_s18 }
  0x1a   : > { %s953_s15 = scalar_select %p30_p7, %s859_s20, %s32_s14  }
  0x1b   : > { %p955_p11 = por %p40_p9, %p39_p8  ;;  %p961_p12 = por %p46_p1, %p45_p10 }
  0x1c   : > { %1100 = sst [smem:[#allocation17_spill]] %s953_s15  ;;  %p163_p13 = scmp.eq.s32.totalorder %s923_s25, 1 }
  0x1d   : > { %p169_p0 = scmp.eq.s32.totalorder %s554_s11, 1  ;;  %p621_p2 = scmp.lt.s32.totalorder %s863_s21, 2 }
  0x1e   : > { %s217_s22 = sand.u32 1, %s859_s20   ;;  %p968_p4 = por %p163_p13, %p39_p8 }
  0x1f   : > { %p972_p6 = por %p169_p0, %p45_p10  ;;  %s976_s27 = sshll.u32 %s217_s22, 2 }
  0x20   : > { %s560_s28 = sshll.u32 %s863_s21, 2  ;;  %s221_s7 = scalar_lea.vmem [#allocation2], %s976_s27 }
  0x21   : > { %s225_s6 = scalar_lea.hbm %s1087_s0, %s560_s28  ;;  %s229_s8 = sshll.u32 %s221_s7, 4  ;;  %s230_s8 = int_to_ptr.vmem [resolvable:$true] %s229_s8 }
  0x22   : > { %s227_s9 = sshll.u32 %s225_s6, 4  ;;  %p985_p7 = pnand %p621_p2, %p955_p11  ;;  %s228_s9 = int_to_ptr.hbm [resolvable:$true] %s227_s9 }
  0x23   : > { %s250_s14 = scalar_lea.hbm %s1089_s2, %s560_s28  ;;  %s242_s3 = sand.u32 1, %s863_s21  }
  0x24   : > { %s218_s4 = scalar_lea.sflag [#allocation3], %s217_s22  ;;  %s725_s29 = sshra.s32 %s228_s9, 4  ;;  %s726_s29 = int_to_ptr.hbm [resolvable:$true] %s725_s29 }
  0x25   : > { %s727_s30 = scalar_lea.hbm %s726_s29, 4  ;;  %p729_p9 = pneg %p985_p7 }
  0x26   : > { %p728_p8 = scmp.ne.s32.totalorder %s726_s29, %s727_s30  ;;  %s732_s7 = scalar_lea.hbm %s1087_s0, 8 }
  0x27   : > { %p733_p13 = scmp.lt.s32.totalorder %s726_s29, %s1087_s0  ;;  %p734_p0 = scmp.lt.s32.totalorder %s732_s7, %s727_s30 }
  0x28   : > { %p730_p10 = pnand %p729_p9, %p728_p8 }
  0x29   : > { %p735_p2 = por %p734_p0, %p733_p13 }
  0x2a   : > { %p731_p11 = pneg %p730_p10 }
  0x2c   : > { %p736_p5 = pnand %p735_p2, %p731_p11 }
  0x2e   : > { %739 = shalt.err (!%p736_p5)
}
  0x2f   : > { %611 = dma.hbm_to_vmem [thread:$0]  (!%p985_p7), %s228_s9, 64, %s230_s8, %s218_s4  }
  0x30   : > { %s252_s22 = sshll.u32 %s250_s14, 4  ;;  %s246_s28 = scalar_lea.vmem [#allocation5], %s976_s27  ;;  %s253_s22 = int_to_ptr.hbm [resolvable:$true] %s252_s22 }
  0x31   : > { %s254_s15 = sshll.u32 %s246_s28, 4  ;;  %s243_s16 = scalar_lea.sflag [#allocation6], %s242_s3  ;;  %s255_s15 = int_to_ptr.vmem [resolvable:$true] %s254_s15 }
  0x32   : > { %s755_s6 = sshra.s32 %s253_s22, 4  ;;  %s762_s7 = scalar_lea.hbm %s1089_s2, 8  ;;  %s756_s6 = int_to_ptr.hbm [resolvable:$true] %s755_s6 }
  0x33   : > { %s757_s20 = scalar_lea.hbm %s756_s6, 4  ;;  %p763_p5 = scmp.lt.s32.totalorder %s756_s6, %s1089_s2 }
  0x34   : > { %p758_p8 = scmp.ne.s32.totalorder %s756_s6, %s757_s20  ;;  %p764_p13 = scmp.lt.s32.totalorder %s762_s7, %s757_s20 }
  0x36   : > { %p760_p10 = pnand %p758_p8, %p729_p9  ;;  %p765_p0 = por %p764_p13, %p763_p5 }
  0x38   : > { %p761_p11 = pneg %p760_p10 }
  0x3a   : > { %p766_p2 = pnand %p765_p0, %p761_p11 }
  0x3c   : > { %769 = shalt.err (!%p766_p2)
}
  0x3d   : > { %614 = dma.hbm_to_vmem [thread:$0]  (!%p985_p7), %s253_s22, 64, %s255_s15, %s243_s16  }
  0x3e   : > { %263 = sbr.rel (%p928_p3) target bundleno = 525 (0x20d), region = 40  ;;  %s1021_s3 = sand.u32 (!%p928_p3), 1, %s855_s19  }
  0x3f   : > { %s564_s27 = sshll.u32 (!%p928_p3), %s1021_s3, 2  ;;  %s266_s8 = scalar_lea.sflag (!%p928_p3), [#allocation3], %s1021_s3 }
  0x40   : > { %s269_s9 = scalar_lea.vmem (!%p928_p3), [#allocation2], %s564_s27 }
  0x43   : > { %830 = dma.done.wait (%p961_p12), %s266_s8, 64  }
  0x44   : > { %832 = vsyncadd (%p961_p12), %s266_s8, 4294967232  ;;  %s275_s20 = sand.u32 1, %s923_s25   ;;  %s1030_s26 = scalar_lea.vmem [#allocation5], %s564_s27 }
  0x45   : > { %s276_s15 = scalar_lea.sflag [#allocation6], %s275_s20 }
  0x46   : > { %834 = dma.done.wait (%p961_p12), %s276_s15, 64  }
  0x47   : > { %836 = vsyncadd (%p961_p12), %s276_s15, 4294967232 }
  0x48   : > { %838 = dma.done.wait (%p46_p1), [#allocation6], 128  }
  0x49   : > { %840 = vsyncadd (%p46_p1), [#allocation6], 4294967168 }
  0x4a   : > { %842 = dma.done.wait (%p46_p1), [#allocation9], 256  }
  0x4b   : > { %844 = vsyncadd (%p46_p1), [#allocation9], 4294967040  ;;  %p324_p3 = scmp.lt.s32.totalorder %s923_s25, 1  ;;  %v584_v0 = vld [vmem:[#allocation7] sm:$0xff]  ;;  %vm339_vm0 = vcmask 130048   ;;  %vm359_vm1 = vcmask 261120   ;;  %s433_s16 = scalar_lea.hbm %s1092_s5, %s923_s25 }
  0x4c   : > { %350 = vmatpush.bf16.msra.mxu0 %v584_v0  ;;  %v328_v2 = vld [vmem:[%s269_s9] sm:$0xf]  ;;  %v585_v11 = vld [vmem:[#allocation8] sm:$0xff]  ;;  %v329_v28 = vld [vmem:[%s1030_s26] sm:$0xf]  ;;  %s323_s6 = scalar_lea.vmem [#allocation10], %s1021_s3 }
  0x4d   : > { %s325_s10 = scalar_select %p324_p3, %s923_s25, 1  ;;  %v356_v3 = vunpack.c.l.bf16 %v328_v2  ;;  %v586_v9 = vld [vmem:[#allocation8 + $0x8] sm:$0xff]  ;;  %v381_v29 = vunpack.c.l.bf16 %v329_v28 }
  0x4e   : > { %416 = vmatpush.bf16.msra.mxu1 %v586_v9  ;;  %s435_s29 = sshll.u32 %s323_s6, 4  ;;  %s437_s30 = sshll.u32 %s433_s16, 4  ;;  %s436_s29 = int_to_ptr.vmem [resolvable:$true] %s435_s29  ;;  %s438_s30 = int_to_ptr.hbm [resolvable:$true] %s437_s30 }
  0x4f   : > { %s326_s17 = scalar_lea.vmem %s1088_s1, %s325_s10  ;;  %s425_s7 = scalar_lea.sflag [#allocation4], %s1021_s3 }
  0x50   : > { %v330_v1 = vld [vmem:[%s326_s17] sm:$0x1]  ;;  %s799_s11 = sshra.s32 %s438_s30, 4  ;;  %s805_s9 = scalar_lea.hbm %s1092_s5, 2  ;;  %s800_s11 = int_to_ptr.hbm [resolvable:$true] %s799_s11 }
  0x51   : > { %572 = vmatmul.msk.bf16.vlgmr.msra.gmra.mxu0 %vm339_vm0, %v330_v1  ;;  %s801_s4 = scalar_lea.hbm %s800_s11, 1  ;;  %p806_p9 = scmp.lt.s32.totalorder %s800_s11, %s1092_s5 }
  0x52   : > { %417 = vmatpush.bf16.msra.mxu1 %v585_v11  ;;  %p802_p1 = scmp.ne.s32.totalorder %s800_s11, %s801_s4  ;;  %p807_p8 = scmp.lt.s32.totalorder %s805_s9, %s801_s4 }
  0x54   : > { %p803_p12 = pnand %p802_p1, %p968_p4  ;;  %p808_p10 = por %p807_p8, %p806_p9 }
  0x56   : > { %p804_p7 = pneg %p803_p12 }
  0x58   : > { %p809_p11 = pnand %p808_p10, %p804_p7 }
  0xce   : > { %v352_v4 = vpop.f32.mrf.mxu0 }
  0xcf   : > { %v357_v5 = vperm.slane %v352_v4, 0 }
  0xd1   : > { %v358_v6 = vmul.f32 %v357_v5, %v356_v3 }
  0xd3   : > { %v360_v7 = vsel %vm359_vm1, %v358_v6, 0.0 }
  0xd4   : > { %361 = vadd.xlane.f32.xlu0 %v360_v7 }
  0xd6   : > { %v354_v8 = vpop.f32.mrf.mxu0 }
 0x147   : > { %v362_v10 = vpop.xlane.xlu0 %361 }
 0x148   : > { %v363_v12 = vmul.f32 0.17677669, %v362_v10 }
 0x14a   : > { %v364_v13 = vrot.slane %v363_v12, 4 }
 0x14c   : > { %v365_v14 = vmax.f32 %v363_v12, %v364_v13 }
 0x14e   : > { %v366_v15 = vrot.slane %v365_v14, 2 }
 0x150   : > { %v367_v16 = vmax.f32 %v365_v14, %v366_v15 }
 0x152   : > { %v368_v17 = vrot.slane %v367_v16, 1 }
 0x154   : > { %v369_v18 = vmax.f32 %v367_v16, %v368_v17 }
 0x156   : > { %v370_v19 = vsub.f32 %v363_v12, %v369_v18 }
 0x158   : > { %v371_v20 = vmul.f32 1.442695, %v370_v19 }
 0x15a   : > { %661 = vpow2.f32 %v371_v20 }
 0x160   : > { %v662_v21 = vpop.eup %661 }
 0x161   : > { %v373_v22 = vrot.slane %v662_v21, 4 }
 0x163   : > { %v374_v23 = vadd.f32 %v662_v21, %v373_v22 }
 0x165   : > { %v375_v24 = vrot.slane %v374_v23, 2 }
 0x167   : > { %v376_v25 = vadd.f32 %v375_v24, %v374_v23 }
 0x169   : > { %v377_v26 = vrot.slane %v376_v25, 1 }
 0x16b   : > { %v378_v27 = vadd.f32 %v377_v26, %v376_v25 }
 0x16d   : > { %663 = vrcp.f32 %v378_v27 }
 0x173   : > { %v664_v30 = vpop.eup %663 }
 0x174   : > { %v380_v31 = vmul.f32 %v664_v30, %v662_v21 }
 0x176   : > { %v382_v32 = vmul.f32 %v381_v29, %v380_v31 }
 0x178   : > { %v383_v33 = vsel %vm359_vm1, %v382_v32, 0.0 }
 0x179   : > { %v384_v34 = vrot.slane %v383_v33, 4 }
 0x17b   : > { %v385_v35 = vadd.f32 %v384_v34, %v383_v33 }
 0x17d   : > { %v386_v36 = vrot.slane %v385_v35, 2 }
 0x17f   : > { %v387_v37 = vadd.f32 %v386_v36, %v385_v35 }
 0x181   : > { %v388_v38 = vrot.slane %v387_v37, 1 }
 0x183   : > { %v389_v39 = vadd.f32 %v388_v38, %v387_v37 }
 0x185   : > { %v390_v40 = vpack.c.bf16 %v389_v39, %v389_v39 }
 0x187   : > { %581 = vmatmul.msk.bf16.vlgmr.msra.gmra.mxu1 %vm359_vm1, %v390_v40 }
 0x204   : > { %v419_v41 = vpop.f32.mrf.mxu1 }
 0x205   : > { %423 = vst [vmem:[%s323_s6] sm:$0x1] %v419_v41 }
 0x206   : > { %812 = shalt.err (!%p809_p11)
}
 0x207   : > { %599 = dma.vmem_to_hbm [thread:$0]  (%p968_p4), %s436_s29, 16, %s438_s30, %s425_s7  }
 0x20c   : > { %v421_v42 = vpop.f32.mrf.mxu1 }
 0x20d PF: > { %s449_s3 = sand.u32 1, %s851_s18   ;;  %p1106_p5 = scmp.ge.s32.totalorder %s863_s21, 2 }
 0x20e   : > { %s450_s15 = scalar_lea.sflag [#allocation4], %s449_s3 }
 0x20f   : > { %p616_p13 = pnand %p1106_p5, %p972_p6 }
 0x211   : > { %p617_p0 = pneg %p616_p13 }
 0x213   : > { %846 = dma.done.wait (%p617_p0), %s450_s15, 16  }
 0x214   : > { %848 = vsyncadd (%p617_p0), %s450_s15, 4294967280  ;;  %s1107_s26 = sld [smem:[#allocation16_spill]]  ;;  %p22_p2 = scmp.ge.s32.totalorder %s942_s12, 4  }
 0x215   : > { %s1108_s20 = sld [smem:[#allocation17_spill]]  ;;  %s1109_s18 = smov %s855_s19 }
 0x216   : > { %s1111_s21 = smov %s942_s12  ;;  %24 = sbr.rel (!%p22_p2) target bundleno = 11 (0xb), region = 109 }
 0x21a   : > { %s1110_s19 = smov %s1107_s26 }
 0x21b   :  { %455 = vsyncpa [#allocation3], 1 }
 0x21c   :  { %457 = vsyncpa [#allocation3 + $0x1], 1 }
 0x21d   :  { %458 = vsyncpa [#allocation6], 1 }
 0x21e   :  { %460 = vsyncpa [#allocation6 + $0x1], 1 }
 0x21f   :  { %461 = vsyncpa [#allocation9], 1 }
 0x220   :  { %462 = vsyncpa [#allocation4], 1 }
 0x221   :  { %464 = vsyncpa [#allocation4 + $0x1], 1 }

</bundles_post_ra>
